<compile_context>
chip_gen: v6e
topology: v6e:2x2x1
jax: 0.10.0
libtpu: 0.0.40
codegen_flags: <defaults>
</compile_context>

<pallas_src>
import math
import numpy as np
import jax
import jax.numpy as jnp
from jax.experimental import pallas as pl
from jax.experimental.pallas import tpu as pltpu


# ------------------------- degree / mask construction ------------------------
def _out_degree_hidden(dim_s, dim_next):
    n = math.ceil(dim_next / dim_s)
    return np.tile(np.arange(dim_s), n)[:dim_next]


def _in_degree(dim_s, dim_a):
    return np.concatenate(
        [np.arange(1, dim_s + 1).astype(np.float64),
         np.zeros(dim_s), np.zeros(dim_a)]
    )


def _hidden_mask(out_deg, in_deg):
    # MaskedLinear(next_layer='hidden'): mask[o, i] = (out_deg[o] >= in_deg[i])
    return (out_deg[:, None] >= in_deg[None, :]).astype(np.float32)


def _out_mask(out_deg, in_deg):
    # MaskedLinear(next_layer='out'): mask[o, i] = (out_deg[o] > in_deg[i])
    return (out_deg[:, None] > in_deg[None, :]).astype(np.float32)


def _round_up(x, m):
    return ((x + m - 1) // m) * m


# ------------------------------- Pallas kernel --------------------------------
def _make_dmade_kernel(num_blocks):
    """Kernel args: x tile, then (fused_w, b) pairs for:
       first_layer, [block0.lin0, block0.lin1, block1.lin0, ...], last_layer,
       followed by the output ref.  Masks are already folded into the weights."""

    def kernel(x_ref, *rest):
        o_ref = rest[-1]
        pr = rest[:-1]

        def linear(h, idx):
            # fused (masked) weight @ h  + bias broadcast (once per layer)
            return (jnp.dot(h, pr[idx][...], preferred_element_type=jnp.float32)
                    + pr[idx + 1][...])

        tmp = linear(x_ref[...], 0)
        idx = 2
        # num_blocks is small & static -> unrolled; for large num_blocks switch to a
        # stacked-weight lax.fori_loop to bound vreg live ranges.
        for _ in range(num_blocks):
            # MaskedResidualBlock (no batch-norm, dropout p=0):
            #   out = in + lin1(relu(lin0(relu(in))))
            r = jnp.maximum(tmp, 0.0)
            r = linear(r, idx); idx += 2
            r = jnp.maximum(r, 0.0)
            r = linear(r, idx); idx += 2
            tmp = tmp + r
        o_ref[...] = linear(tmp, idx)

    return kernel


def dmade_forward(x, fused_params, dim_s, num_blocks):
    """x: [B, Din] f32.  fused_params: flat list [w0, b0, w1, b1, ...] already
    mask-folded and zero-padded to lane-dense shapes.  Returns [B, dim_s]."""
    B, din = x.shape
    din_p = fused_params[0].shape[0]
    dout_p = fused_params[-2].shape[1]

    # Batch tile: multiple of 8 sublanes, capped at 256 rows (fp32).
    TB = min(256, _round_up(B, 8))
    B_pad = _round_up(B, TB)

    # Zero-pad input: padded rows/feature columns multiply only zero weight rows,
    # so the un-padded output entries are bit-identical to the un-padded compute.
    x_pad = jnp.zeros((B_pad, din_p), jnp.float32).at[:B, :din].set(x)

    grid = (B_pad // TB,)

    in_specs = [pl.BlockSpec((TB, din_p), lambda i: (i, 0))]
    for p in fused_params:
        # Weights/biases: constant index_map -> stay resident in VMEM across steps.
        in_specs.append(pl.BlockSpec(p.shape, lambda i: (0, 0)))
    out_specs = pl.BlockSpec((TB, dout_p), lambda i: (i, 0))

    # Advisory cost estimate for XLA's scheduler.
    flops = 0
    param_bytes = 0
    for k in range(0, len(fused_params), 2):
        w = fused_params[k]
        b = fused_params[k + 1]
        flops += 2 * B_pad * w.shape[0] * w.shape[1]
        param_bytes += (w.size + b.size) * 4
    bytes_accessed = param_bytes + (x_pad.size + B_pad * dout_p) * 4
    cost = pl.CostEstimate(flops=flops, transcendentals=0,
                           bytes_accessed=bytes_accessed)

    out = pl.pallas_call(
        _make_dmade_kernel(num_blocks),
        out_shape=jax.ShapeDtypeStruct((B_pad, dout_p), jnp.float32),
        grid=grid,
        in_specs=in_specs,
        out_specs=out_specs,
        compiler_params=pltpu.CompilerParams(
            dimension_semantics=("parallel",)),
        cost_estimate=cost,
    )(x_pad, *fused_params)

    return out[:B, :dim_s]


# --------------------------- deterministic parameters -------------------------
def make_dmade_params(key, dim_s, dim_a, dim_hidden, num_blocks):
    """Returns flat list of raw (wT [in,out], maskT [in,out], b [1,out]) triples
    matching the PyTorch module's layer order (first, blocks, last)."""
    din = 2 * dim_s + dim_a
    params = []

    def linear_init(k, fan_in, fan_out, bound=None):
        kw, kb = jax.random.split(k)
        if bound is None:
            bound = 1.0 / math.sqrt(fan_in)
        w = jax.random.uniform(kw, (fan_out, fan_in), jnp.float32, -bound, bound)
        b = jax.random.uniform(kb, (1, fan_out), jnp.float32, -bound, bound)
        return w, b

    keys = jax.random.split(key, 2 + 2 * num_blocks)
    ki = 0

    # first layer
    in_deg = _in_degree(dim_s, dim_a)
    out_deg = _out_degree_hidden(dim_s, dim_hidden)
    mask = _hidden_mask(out_deg, in_deg)                       # [H, Din]
    w, b = linear_init(keys[ki], din, dim_hidden); ki += 1
    params += [w.T, jnp.asarray(mask.T), b]
    prev_deg = out_deg

    # residual blocks
    for _ in range(num_blocks):
        # linear_0
        deg0 = _out_degree_hidden(dim_s, dim_hidden)
        m0 = _hidden_mask(deg0, prev_deg)
        w0, b0 = linear_init(keys[ki], dim_hidden, dim_hidden); ki += 1
        params += [w0.T, jnp.asarray(m0.T), b0]
        # linear_1 (zero_initialization=True -> uniform(-1e-3, 1e-3))
        deg1 = _out_degree_hidden(dim_s, dim_hidden)
        m1 = _hidden_mask(deg1, deg0)
        w1, b1 = linear_init(keys[ki], dim_hidden, dim_hidden, bound=1e-3); ki += 1
        params += [w1.T, jnp.asarray(m1.T), b1]
        prev_deg = deg1

    # last layer (next_layer='out')
    out_deg_last = np.arange(1, dim_s + 1)
    m_last = _out_mask(out_deg_last, prev_deg)                 # [dim_s, H]
    wl, bl = linear_init(keys[ki], dim_hidden, dim_s); ki += 1
    params += [wl.T, jnp.asarray(m_last.T), bl]
    return params


def fuse_and_pad_params(raw_params, lane=128):
    """Fold masks into weights and zero-pad to lane-dense shapes.
    Input: flat [wT, maskT, b, ...];  output: flat [w_fused_pad, b_pad, ...]."""
    fused = []
    for idx in range(0, len(raw_params), 3):
        wT, mT, b = raw_params[idx], raw_params[idx + 1], raw_params[idx + 2]
        wm = jnp.asarray(wT, jnp.float32) * jnp.asarray(mT, jnp.float32)  # [in, out]
        d_in, d_out = wm.shape
        in_p = _round_up(d_in, lane)
        out_p = _round_up(d_out, lane)
        wm_p = jnp.zeros((in_p, out_p), jnp.float32).at[:d_in, :d_out].set(wm)
        b_p = jnp.zeros((1, out_p), jnp.float32).at[:, :d_out].set(
            jnp.asarray(b, jnp.float32))
        fused += [wm_p, b_p]
    # TODO(synk): for v6e/v7x bandwidth-bound configs, cast fused weights to bf16 here
    # (dot keeps preferred_element_type=f32); kept f32 for exact parity at small shapes.
    return fused


# --------------------------------- reference ----------------------------------
def dmade_reference(x, raw_params, num_blocks):
    def lin(h, idx):
        w = raw_params[idx] * raw_params[idx + 1]
        return h @ w + raw_params[idx + 2]

    tmp = lin(x, 0)
    idx = 3
    for _ in range(num_blocks):
        r = jnp.maximum(tmp, 0.0)
        r = lin(r, idx); idx += 3
        r = jnp.maximum(r, 0.0)
        r = lin(r, idx); idx += 3
        tmp = tmp + r
    return lin(tmp, idx)


# ----------------------------------- main --------------------------------------
if __name__ == "__main__":
    dim_s, dim_a, dim_hidden, num_blocks = 4, 4, 32, 2
    batch = 8
    din = 2 * dim_s + dim_a                                    # inputs are [s, s', a]

    key = jax.random.PRNGKey(0)
    kx, kp = jax.random.split(key)
    x = jax.random.normal(kx, (batch, din), jnp.float32)

    raw_params = make_dmade_params(kp, dim_s, dim_a, dim_hidden, num_blocks)
    fused_params = fuse_and_pad_params(raw_params)

    out = dmade_forward(x, fused_params, dim_s, num_blocks)
    out = jax.block_until_ready(out)

    ref = dmade_reference(x, raw_params, num_blocks)
    np.testing.assert_allclose(np.asarray(out), np.asarray(ref), rtol=1e-5, atol=1e-5)

    print("KERNEL_OK")
</pallas_src>

<mosaic_0001>
module attributes {stable_mosaic.version = 11 : i64} {
  func.func @kernel(%arg0: i32, %arg1: memref<8x128xf32, #tpu.memory_space<vmem>>, %arg2: memref<128x128xf32, #tpu.memory_space<vmem>>, %arg3: memref<1x128xf32, #tpu.memory_space<vmem>>, %arg4: memref<128x128xf32, #tpu.memory_space<vmem>>, %arg5: memref<1x128xf32, #tpu.memory_space<vmem>>, %arg6: memref<128x128xf32, #tpu.memory_space<vmem>>, %arg7: memref<1x128xf32, #tpu.memory_space<vmem>>, %arg8: memref<128x128xf32, #tpu.memory_space<vmem>>, %arg9: memref<1x128xf32, #tpu.memory_space<vmem>>, %arg10: memref<128x128xf32, #tpu.memory_space<vmem>>, %arg11: memref<1x128xf32, #tpu.memory_space<vmem>>, %arg12: memref<128x128xf32, #tpu.memory_space<vmem>>, %arg13: memref<1x128xf32, #tpu.memory_space<vmem>>, %arg14: memref<8x128xf32, #tpu.memory_space<vmem>>) attributes {dimension_semantics = [#tpu.dimension_semantics<parallel>], iteration_bounds = array<i64: 1>, scalar_prefetch = 0 : i64, scratch_operands = 0 : i64, tpu.core_type = #tpu.core_type<tc>, window_params = [{transform_indices = @transform_0, window_bounds = array<i64: 8, 128>}, {pipeline_mode = #tpu.pipeline_mode<synchronous>, transform_indices = @transform_1, window_bounds = array<i64: 128, 128>}, {pipeline_mode = #tpu.pipeline_mode<synchronous>, transform_indices = @transform_2, window_bounds = array<i64: 1, 128>}, {pipeline_mode = #tpu.pipeline_mode<synchronous>, transform_indices = @transform_3, window_bounds = array<i64: 128, 128>}, {pipeline_mode = #tpu.pipeline_mode<synchronous>, transform_indices = @transform_4, window_bounds = array<i64: 1, 128>}, {pipeline_mode = #tpu.pipeline_mode<synchronous>, transform_indices = @transform_5, window_bounds = array<i64: 128, 128>}, {pipeline_mode = #tpu.pipeline_mode<synchronous>, transform_indices = @transform_6, window_bounds = array<i64: 1, 128>}, {pipeline_mode = #tpu.pipeline_mode<synchronous>, transform_indices = @transform_7, window_bounds = array<i64: 128, 128>}, {pipeline_mode = #tpu.pipeline_mode<synchronous>, transform_indices = @transform_8, window_bounds = array<i64: 1, 128>}, {pipeline_mode = #tpu.pipeline_mode<synchronous>, transform_indices = @transform_9, window_bounds = array<i64: 128, 128>}, {pipeline_mode = #tpu.pipeline_mode<synchronous>, transform_indices = @transform_10, window_bounds = array<i64: 1, 128>}, {pipeline_mode = #tpu.pipeline_mode<synchronous>, transform_indices = @transform_11, window_bounds = array<i64: 128, 128>}, {pipeline_mode = #tpu.pipeline_mode<synchronous>, transform_indices = @transform_12, window_bounds = array<i64: 1, 128>}, {transform_indices = @transform_13, window_bounds = array<i64: 8, 128>}]} {
    %c0 = arith.constant 0 : index
    %c0_0 = arith.constant 0 : index
    %0 = vector.load %arg1[%c0, %c0_0] : memref<8x128xf32, #tpu.memory_space<vmem>>, vector<8x128xf32>
    %c0_1 = arith.constant 0 : index
    %c0_2 = arith.constant 0 : index
    %1 = vector.load %arg2[%c0_1, %c0_2] : memref<128x128xf32, #tpu.memory_space<vmem>>, vector<128x128xf32>
    %cst = arith.constant dense<0.000000e+00> : vector<8x128xf32>
    %2 = tpu.matmul %0, %1, %cst {dimension_numbers = #tpu.dot_dimension_numbers<[1], [0], [0], [1], [0, 0, 1, 1], [], []>} : vector<8x128xf32>, vector<128x128xf32>, vector<8x128xf32> -> vector<8x128xf32>
    %c0_3 = arith.constant 0 : index
    %c0_4 = arith.constant 0 : index
    %3 = vector.load %arg3[%c0_3, %c0_4] : memref<1x128xf32, #tpu.memory_space<vmem>>, vector<1x128xf32>
    %4 = vector.broadcast %3 : vector<1x128xf32> to vector<8x128xf32>
    %5 = arith.addf %2, %4 : vector<8x128xf32>
    %cst_5 = arith.constant 0.000000e+00 : f32
    %6 = vector.broadcast %cst_5 : f32 to vector<8x128xf32>
    %7 = arith.maximumf %5, %6 : vector<8x128xf32>
    %c0_6 = arith.constant 0 : index
    %c0_7 = arith.constant 0 : index
    %8 = vector.load %arg4[%c0_6, %c0_7] : memref<128x128xf32, #tpu.memory_space<vmem>>, vector<128x128xf32>
    %cst_8 = arith.constant dense<0.000000e+00> : vector<8x128xf32>
    %9 = tpu.matmul %7, %8, %cst_8 {dimension_numbers = #tpu.dot_dimension_numbers<[1], [0], [0], [1], [0, 0, 1, 1], [], []>} : vector<8x128xf32>, vector<128x128xf32>, vector<8x128xf32> -> vector<8x128xf32>
    %c0_9 = arith.constant 0 : index
    %c0_10 = arith.constant 0 : index
    %10 = vector.load %arg5[%c0_9, %c0_10] : memref<1x128xf32, #tpu.memory_space<vmem>>, vector<1x128xf32>
    %11 = vector.broadcast %10 : vector<1x128xf32> to vector<8x128xf32>
    %12 = arith.addf %9, %11 : vector<8x128xf32>
    %cst_11 = arith.constant 0.000000e+00 : f32
    %13 = vector.broadcast %cst_11 : f32 to vector<8x128xf32>
    %14 = arith.maximumf %12, %13 : vector<8x128xf32>
    %c0_12 = arith.constant 0 : index
    %c0_13 = arith.constant 0 : index
    %15 = vector.load %arg6[%c0_12, %c0_13] : memref<128x128xf32, #tpu.memory_space<vmem>>, vector<128x128xf32>
    %cst_14 = arith.constant dense<0.000000e+00> : vector<8x128xf32>
    %16 = tpu.matmul %14, %15, %cst_14 {dimension_numbers = #tpu.dot_dimension_numbers<[1], [0], [0], [1], [0, 0, 1, 1], [], []>} : vector<8x128xf32>, vector<128x128xf32>, vector<8x128xf32> -> vector<8x128xf32>
    %c0_15 = arith.constant 0 : index
    %c0_16 = arith.constant 0 : index
    %17 = vector.load %arg7[%c0_15, %c0_16] : memref<1x128xf32, #tpu.memory_space<vmem>>, vector<1x128xf32>
    %18 = vector.broadcast %17 : vector<1x128xf32> to vector<8x128xf32>
    %19 = arith.addf %16, %18 : vector<8x128xf32>
    %20 = arith.addf %5, %19 : vector<8x128xf32>
    %cst_17 = arith.constant 0.000000e+00 : f32
    %21 = vector.broadcast %cst_17 : f32 to vector<8x128xf32>
    %22 = arith.maximumf %20, %21 : vector<8x128xf32>
    %c0_18 = arith.constant 0 : index
    %c0_19 = arith.constant 0 : index
    %23 = vector.load %arg8[%c0_18, %c0_19] : memref<128x128xf32, #tpu.memory_space<vmem>>, vector<128x128xf32>
    %cst_20 = arith.constant dense<0.000000e+00> : vector<8x128xf32>
    %24 = tpu.matmul %22, %23, %cst_20 {dimension_numbers = #tpu.dot_dimension_numbers<[1], [0], [0], [1], [0, 0, 1, 1], [], []>} : vector<8x128xf32>, vector<128x128xf32>, vector<8x128xf32> -> vector<8x128xf32>
    %c0_21 = arith.constant 0 : index
    %c0_22 = arith.constant 0 : index
    %25 = vector.load %arg9[%c0_21, %c0_22] : memref<1x128xf32, #tpu.memory_space<vmem>>, vector<1x128xf32>
    %26 = vector.broadcast %25 : vector<1x128xf32> to vector<8x128xf32>
    %27 = arith.addf %24, %26 : vector<8x128xf32>
    %cst_23 = arith.constant 0.000000e+00 : f32
    %28 = vector.broadcast %cst_23 : f32 to vector<8x128xf32>
    %29 = arith.maximumf %27, %28 : vector<8x128xf32>
    %c0_24 = arith.constant 0 : index
    %c0_25 = arith.constant 0 : index
    %30 = vector.load %arg10[%c0_24, %c0_25] : memref<128x128xf32, #tpu.memory_space<vmem>>, vector<128x128xf32>
    %cst_26 = arith.constant dense<0.000000e+00> : vector<8x128xf32>
    %31 = tpu.matmul %29, %30, %cst_26 {dimension_numbers = #tpu.dot_dimension_numbers<[1], [0], [0], [1], [0, 0, 1, 1], [], []>} : vector<8x128xf32>, vector<128x128xf32>, vector<8x128xf32> -> vector<8x128xf32>
    %c0_27 = arith.constant 0 : index
    %c0_28 = arith.constant 0 : index
    %32 = vector.load %arg11[%c0_27, %c0_28] : memref<1x128xf32, #tpu.memory_space<vmem>>, vector<1x128xf32>
    %33 = vector.broadcast %32 : vector<1x128xf32> to vector<8x128xf32>
    %34 = arith.addf %31, %33 : vector<8x128xf32>
    %35 = arith.addf %20, %34 : vector<8x128xf32>
    %c0_29 = arith.constant 0 : index
    %c0_30 = arith.constant 0 : index
    %36 = vector.load %arg12[%c0_29, %c0_30] : memref<128x128xf32, #tpu.memory_space<vmem>>, vector<128x128xf32>
    %cst_31 = arith.constant dense<0.000000e+00> : vector<8x128xf32>
    %37 = tpu.matmul %35, %36, %cst_31 {dimension_numbers = #tpu.dot_dimension_numbers<[1], [0], [0], [1], [0, 0, 1, 1], [], []>} : vector<8x128xf32>, vector<128x128xf32>, vector<8x128xf32> -> vector<8x128xf32>
    %c0_32 = arith.constant 0 : index
    %c0_33 = arith.constant 0 : index
    %38 = vector.load %arg13[%c0_32, %c0_33] : memref<1x128xf32, #tpu.memory_space<vmem>>, vector<1x128xf32>
    %39 = vector.broadcast %38 : vector<1x128xf32> to vector<8x128xf32>
    %40 = arith.addf %37, %39 : vector<8x128xf32>
    %c0_34 = arith.constant 0 : index
    %c0_35 = arith.constant 0 : index
    %41 = vector.load %arg14[%c0_34, %c0_35] : memref<8x128xf32, #tpu.memory_space<vmem>>, vector<8x128xf32>
    tpu.vector_store %arg14[%c0_34, %c0_35], %40 {strides = array<i32>} : memref<8x128xf32, #tpu.memory_space<vmem>>, vector<8x128xf32>,
    return
  }
  func.func @transform_0(%arg0: i32) -> (i32, i32) {
    %c0_i32 = arith.constant 0 : i32
    %c0_i32_0 = arith.constant 0 : i32
    return %arg0, %c0_i32 : i32, i32
  }
  func.func @transform_1(%arg0: i32) -> (i32, i32) {
    %c0_i32 = arith.constant 0 : i32
    %c0_i32_0 = arith.constant 0 : i32
    %c0_i32_1 = arith.constant 0 : i32
    return %c0_i32, %c0_i32_0 : i32, i32
  }
  func.func @transform_2(%arg0: i32) -> (i32, i32) {
    %c0_i32 = arith.constant 0 : i32
    %c0_i32_0 = arith.constant 0 : i32
    %c0_i32_1 = arith.constant 0 : i32
    return %c0_i32, %c0_i32_0 : i32, i32
  }
  func.func @transform_3(%arg0: i32) -> (i32, i32) {
    %c0_i32 = arith.constant 0 : i32
    %c0_i32_0 = arith.constant 0 : i32
    %c0_i32_1 = arith.constant 0 : i32
    return %c0_i32, %c0_i32_0 : i32, i32
  }
  func.func @transform_4(%arg0: i32) -> (i32, i32) {
    %c0_i32 = arith.constant 0 : i32
    %c0_i32_0 = arith.constant 0 : i32
    %c0_i32_1 = arith.constant 0 : i32
    return %c0_i32, %c0_i32_0 : i32, i32
  }
  func.func @transform_5(%arg0: i32) -> (i32, i32) {
    %c0_i32 = arith.constant 0 : i32
    %c0_i32_0 = arith.constant 0 : i32
    %c0_i32_1 = arith.constant 0 : i32
    return %c0_i32, %c0_i32_0 : i32, i32
  }
  func.func @transform_6(%arg0: i32) -> (i32, i32) {
    %c0_i32 = arith.constant 0 : i32
    %c0_i32_0 = arith.constant 0 : i32
    %c0_i32_1 = arith.constant 0 : i32
    return %c0_i32, %c0_i32_0 : i32, i32
  }
  func.func @transform_7(%arg0: i32) -> (i32, i32) {
    %c0_i32 = arith.constant 0 : i32
    %c0_i32_0 = arith.constant 0 : i32
    %c0_i32_1 = arith.constant 0 : i32
    return %c0_i32, %c0_i32_0 : i32, i32
  }
  func.func @transform_8(%arg0: i32) -> (i32, i32) {
    %c0_i32 = arith.constant 0 : i32
    %c0_i32_0 = arith.constant 0 : i32
    %c0_i32_1 = arith.constant 0 : i32
    return %c0_i32, %c0_i32_0 : i32, i32
  }
  func.func @transform_9(%arg0: i32) -> (i32, i32) {
    %c0_i32 = arith.constant 0 : i32
    %c0_i32_0 = arith.constant 0 : i32
    %c0_i32_1 = arith.constant 0 : i32
    return %c0_i32, %c0_i32_0 : i32, i32
  }
  func.func @transform_10(%arg0: i32) -> (i32, i32) {
    %c0_i32 = arith.constant 0 : i32
    %c0_i32_0 = arith.constant 0 : i32
    %c0_i32_1 = arith.constant 0 : i32
    return %c0_i32, %c0_i32_0 : i32, i32
  }
  func.func @transform_11(%arg0: i32) -> (i32, i32) {
    %c0_i32 = arith.constant 0 : i32
    %c0_i32_0 = arith.constant 0 : i32
    %c0_i32_1 = arith.constant 0 : i32
    return %c0_i32, %c0_i32_0 : i32, i32
  }
  func.func @transform_12(%arg0: i32) -> (i32, i32) {
    %c0_i32 = arith.constant 0 : i32
    %c0_i32_0 = arith.constant 0 : i32
    %c0_i32_1 = arith.constant 0 : i32
    return %c0_i32, %c0_i32_0 : i32, i32
  }
  func.func @transform_13(%arg0: i32) -> (i32, i32) {
    %c0_i32 = arith.constant 0 : i32
    %c0_i32_0 = arith.constant 0 : i32
    return %arg0, %c0_i32 : i32, i32
  }
}

</mosaic_0001>

<bundles_post_ra>
// kernel: tpu_custom_call.1
= control target key start
LH: loop header
LB: loop body
LE: loop exit
PB: predicated region body
PF: predicated region fallthrough
CT: control target
= control target key end

     0   :  { %18 = vsyncpa [#allocation3], 0  ;;  %s1480_s0 = inlined_call_operand.hbm [shape: f32[8,128], index: 0, kind: input, shape index: {}]   ;;  %s1481_s1 = inlined_call_operand.hbm [shape: f32[128,128], index: 1, kind: input, shape index: {}]   ;;  %s1482_s2 = inlined_call_operand.vmem [shape: f32[1,128], index: 2, kind: input, shape index: {}]   ;;  %s1483_s3 = inlined_call_operand.hbm [shape: f32[128,128], index: 3, kind: input, shape index: {}]   ;;  %s1484_s4 = inlined_call_operand.vmem [shape: f32[1,128], index: 4, kind: input, shape index: {}]   ;;  %s1485_s5 = inlined_call_operand.hbm [shape: f32[128,128], index: 5, kind: input, shape index: {}]   ;;  %s1486_s6 = inlined_call_operand.vmem [shape: f32[1,128], index: 6, kind: input, shape index: {}]   ;;  %s1487_s7 = inlined_call_operand.hbm [shape: f32[128,128], index: 7, kind: input, shape index: {}]   ;;  %s1488_s8 = inlined_call_operand.vmem [shape: f32[1,128], index: 8, kind: input, shape index: {}]   ;;  %s1489_s9 = inlined_call_operand.hbm [shape: f32[128,128], index: 9, kind: input, shape index: {}]   ;;  %s1490_s10 = inlined_call_operand.vmem [shape: f32[1,128], index: 10, kind: input, shape index: {}]   ;;  %s1491_s11 = inlined_call_operand.hbm [shape: f32[128,128], index: 11, kind: input, shape index: {}]   ;;  %s1492_s12 = inlined_call_operand.vmem [shape: f32[1,128], index: 12, kind: input, shape index: {}]   ;;  %s1493_s13 = inlined_call_operand.hbm [shape: f32[8,128], index: 13, kind: output, shape index: {}]  }
   0x1   :  { %19 = vsyncpa [#allocation6], 0 }
   0x2   :  { %20 = vsyncpa [#allocation9], 0 }
   0x3   :  { %21 = vsyncpa [#allocation12], 0 }
   0x4   :  { %22 = vsyncpa [#allocation4], 0  ;;  %s1222_s25 = smov [#allocation5]  }
   0x5   :  { %s38_s26 = sshll.u32 %s1222_s25, 4  ;;  %s39_s26 = int_to_ptr.vmem [resolvable:$true] %s38_s26 }
   0x6   :  { %s1060_s27 = scalar_lea.vmem %s39_s26, 2048  ;;  %p1065_p1 = scmp.lt.s32.totalorder %s39_s26, %s39_s26 }
   0x7   :  { %p1061_p0 = scmp.ne.s32.totalorder %s39_s26, %s1060_s27  ;;  %p1066_p2 = scmp.lt.s32.totalorder %s1060_s27, %s1060_s27 }
   0x9   :  { %p1067_p3 = por %p1066_p2, %p1065_p1 }
   0xb   :  { %p1068_p4 = pnand %p1067_p3, %p1061_p0 }
   0xd   :  { %1071 = shalt.err (!%p1068_p4)
}
   0xe   :  { %s1223_s28 = smov 128   ;;  %s1224_s29 = smov 8  }
   0xf   :  { %44 = dma.hbm_to_vmem [thread:$0]  %s1481_s1, 2048, %s39_s26, [#allocation6], %s1223_s28, %s1223_s28, %s1224_s29  }
  0x10   :  { %s1225_s15 = smov [#allocation8]   ;;  %s1226_s17 = smov [#allocation11]  }
  0x11   :  { %s66_s16 = sshll.u32 %s1225_s15, 4  ;;  %s94_s18 = sshll.u32 %s1226_s17, 4  ;;  %s67_s16 = int_to_ptr.vmem [resolvable:$true] %s66_s16  ;;  %s95_s18 = int_to_ptr.vmem [resolvable:$true] %s94_s18 }
  0x12   :  { %s1080_s19 = scalar_lea.vmem %s67_s16, 2048  ;;  %p1085_p6 = scmp.lt.s32.totalorder %s67_s16, %s67_s16 }
  0x13   :  { %p1081_p5 = scmp.ne.s32.totalorder %s67_s16, %s1080_s19  ;;  %p1086_p7 = scmp.lt.s32.totalorder %s1080_s19, %s1080_s19 }
  0x15   :  { %p1087_p8 = por %p1086_p7, %p1085_p6 }
  0x17   :  { %p1088_p9 = pnand %p1087_p8, %p1081_p5 }
  0x19   :  { %1091 = shalt.err (!%p1088_p9)
}
  0x1a   :  { %72 = dma.hbm_to_vmem [thread:$0]  %s1485_s5, 2048, %s67_s16, [#allocation9], %s1223_s28, %s1223_s28, %s1224_s29  }
  0x1b   :  { %s1100_s1 = scalar_lea.vmem %s95_s18, 2048  ;;  %p1105_p11 = scmp.lt.s32.totalorder %s95_s18, %s95_s18 }
  0x1c   :  { %p1101_p10 = scmp.ne.s32.totalorder %s95_s18, %s1100_s1  ;;  %p1106_p12 = scmp.lt.s32.totalorder %s1100_s1, %s1100_s1 }
  0x1e   :  { %p1107_p13 = por %p1106_p12, %p1105_p11 }
  0x20   :  { %p1108_p0 = pnand %p1107_p13, %p1101_p10 }
  0x22   :  { %1111 = shalt.err (!%p1108_p0)
}
  0x23   :  { %100 = dma.hbm_to_vmem [thread:$0]  %s1489_s9, 2048, %s95_s18, [#allocation12], %s1223_s28, %s1223_s28, %s1224_s29  }
  0x24   :  { %s1227_s24 = smov [#allocation2]   ;;  %s1228_s26 = smov [#allocation7]  }
  0x25   :  { %s29_s25 = sshll.u32 %s1227_s24, 4  ;;  %s52_s5 = sshll.u32 %s1228_s26, 4  ;;  %s30_s25 = int_to_ptr.vmem [resolvable:$true] %s29_s25  ;;  %s53_s5 = int_to_ptr.vmem [resolvable:$true] %s52_s5 }
  0x26   :  { %s1120_s27 = scalar_lea.vmem %s30_s25, 128  ;;  %p1125_p2 = scmp.lt.s32.totalorder %s30_s25, %s30_s25 }
  0x27   :  { %p1121_p1 = scmp.ne.s32.totalorder %s30_s25, %s1120_s27  ;;  %p1126_p3 = scmp.lt.s32.totalorder %s1120_s27, %s1120_s27 }
  0x29   :  { %p1127_p4 = por %p1126_p3, %p1125_p2 }
  0x2b   :  { %p1128_p5 = pnand %p1127_p4, %p1121_p1 }
  0x2d   :  { %1131 = shalt.err (!%p1128_p5)
}
  0x2e   :  { %32 = dma.hbm_to_vmem [thread:$0]  %s1480_s0, 128, %s30_s25, [#allocation3]  }
  0x2f   :  { %s1140_s15 = scalar_lea.vmem %s53_s5, 2048  ;;  %p1145_p7 = scmp.lt.s32.totalorder %s53_s5, %s53_s5 }
  0x30   :  { %p1141_p6 = scmp.ne.s32.totalorder %s53_s5, %s1140_s15  ;;  %p1146_p8 = scmp.lt.s32.totalorder %s1140_s15, %s1140_s15 }
  0x32   :  { %p1147_p9 = por %p1146_p8, %p1145_p7 }
  0x34   :  { %p1148_p10 = pnand %p1147_p9, %p1141_p6 }
  0x36   :  { %1151 = shalt.err (!%p1148_p10)
}
  0x37   :  { %58 = dma.hbm_to_vmem [thread:$0]  %s1483_s3, 2048, %s53_s5, [#allocation6], %s1223_s28, %s1223_s28, %s1224_s29  }
  0x38   :  { %s1229_s17 = smov [#allocation10]   ;;  %s1230_s19 = smov [#allocation13]  }
  0x39   :  { %s80_s18 = sshll.u32 %s1229_s17, 4  ;;  %s108_s0 = sshll.u32 %s1230_s19, 4  ;;  %s81_s18 = int_to_ptr.vmem [resolvable:$true] %s80_s18  ;;  %s109_s0 = int_to_ptr.vmem [resolvable:$true] %s108_s0 }
  0x3a   :  { %s1160_s20 = scalar_lea.vmem %s81_s18, 2048  ;;  %p1165_p12 = scmp.lt.s32.totalorder %s81_s18, %s81_s18 }
  0x3b   :  { %p1161_p11 = scmp.ne.s32.totalorder %s81_s18, %s1160_s20  ;;  %p1166_p13 = scmp.lt.s32.totalorder %s1160_s20, %s1160_s20 }
  0x3d   :  { %p1167_p0 = por %p1166_p13, %p1165_p12 }
  0x3f   :  { %p1168_p1 = pnand %p1167_p0, %p1161_p11 }
  0x41   :  { %1171 = shalt.err (!%p1168_p1)
}
  0x42   :  { %86 = dma.hbm_to_vmem [thread:$0]  %s1487_s7, 2048, %s81_s18, [#allocation9], %s1223_s28, %s1223_s28, %s1224_s29  }
  0x43   :  { %s1180_s3 = scalar_lea.vmem %s109_s0, 2048  ;;  %p1185_p3 = scmp.lt.s32.totalorder %s109_s0, %s109_s0 }
  0x44   :  { %p1181_p2 = scmp.ne.s32.totalorder %s109_s0, %s1180_s3  ;;  %p1186_p4 = scmp.lt.s32.totalorder %s1180_s3, %s1180_s3 }
  0x46   :  { %p1187_p5 = por %p1186_p4, %p1185_p3 }
  0x48   :  { %p1188_p6 = pnand %p1187_p5, %p1181_p2 }
  0x4a   :  { %1191 = shalt.err (!%p1188_p6)
}
  0x4b   :  { %114 = dma.hbm_to_vmem [thread:$0]  %s1491_s11, 2048, %s109_s0, [#allocation12], %s1223_s28, %s1223_s28, %s1224_s29  }
  0x4c   :  { %1212 = dma.done.wait [#allocation3], 128  }
  0x4d   :  { %1213 = vsyncadd [#allocation3], 4294967168 }
  0x4e   :  { %1214 = dma.done.wait [#allocation6], 4096  }
  0x4f   :  { %1215 = vsyncadd [#allocation6], 4294963200 }
  0x50   :  { %1216 = dma.done.wait [#allocation9], 4096  }
  0x51   :  { %1217 = vsyncadd [#allocation9], 4294963200 }
  0x52   :  { %1218 = dma.done.wait [#allocation12], 4096  }
  0x53   :  { %1219 = vsyncadd [#allocation12], 4294963200  ;;  %v1231_v0 = vmov 0.0   ;;  %vm1232_vm0 = vmmov 0   ;;  %v154_v1 = vld [vmem:[#allocation5 + $0x78] sm:$0xff]  ;;  %v153_v2 = vld [vmem:[#allocation5 + $0x70] sm:$0xff] }
  0x54   :  { %830 = vmatprep.subr.mxu0 %v1231_v0  ;;  %862 = vmatprep.mubr.msk.f32.mxu0 %vm1232_vm0, %v1231_v0  ;;  %v152_v3 = vld [vmem:[#allocation5 + $0x68] sm:$0xff]  ;;  %v151_v4 = vld [vmem:[#allocation5 + $0x60] sm:$0xff]  ;;  %v248_v5 = vld [vmem:[#allocation7 + $0x78] sm:$0xff]  ;;  %s1233_s27 = smov [#allocation14]  }
  0x55   :  { %865 = vmatprep.subr.mxu1 %v1231_v0  ;;  %897 = vmatprep.mubr.msk.f32.mxu1 %vm1232_vm0, %v1231_v0  ;;  %v150_v6 = vld [vmem:[#allocation5 + $0x58] sm:$0xff]  ;;  %v247_v7 = vld [vmem:[#allocation7 + $0x70] sm:$0xff]  ;;  %v246_v8 = vld [vmem:[#allocation7 + $0x68] sm:$0xff]  ;;  %s710_s30 = sshll.u32 %s1233_s27, 4  ;;  %s711_s30 = int_to_ptr.vmem [resolvable:$true] %s710_s30 }
  0x56   :  { %831 = vmatpush3.msra.mxu0 %v154_v1  ;;  %866 = vmatpush3.msra.mxu1 %v248_v5  ;;  %v149_v9 = vld [vmem:[#allocation5 + $0x50] sm:$0xff]  ;;  %v245_v10 = vld [vmem:[#allocation7 + $0x60] sm:$0xff]  ;;  %v148_v11 = vld [vmem:[#allocation5 + $0x48] sm:$0xff]  ;;  %s1192_s14 = scalar_lea.vmem %s711_s30, 128  ;;  %p1197_p8 = scmp.lt.s32.totalorder %s711_s30, %s711_s30 }
  0x57   :  { %832 = vmatprep.subr.mxu0 %v1231_v0  ;;  %867 = vmatprep.subr.mxu1 %v1231_v0  ;;  %v244_v12 = vld [vmem:[#allocation7 + $0x58] sm:$0xff]  ;;  %v147_v13 = vld [vmem:[#allocation5 + $0x40] sm:$0xff]  ;;  %v243_v14 = vld [vmem:[#allocation7 + $0x50] sm:$0xff]  ;;  %p1193_p7 = scmp.ne.s32.totalorder %s711_s30, %s1192_s14  ;;  %p1198_p9 = scmp.lt.s32.totalorder %s1192_s14, %s1192_s14 }
  0x58   :  { %833 = vmatpush3.msra.mxu0 %v153_v2  ;;  %868 = vmatpush3.msra.mxu1 %v247_v7  ;;  %v146_v15 = vld [vmem:[#allocation5 + $0x38] sm:$0xff]  ;;  %v242_v16 = vld [vmem:[#allocation7 + $0x48] sm:$0xff]  ;;  %v145_v17 = vld [vmem:[#allocation5 + $0x30] sm:$0xff] }
  0x59   :  { %834 = vmatprep.subr.mxu0 %v1231_v0  ;;  %869 = vmatprep.subr.mxu1 %v1231_v0  ;;  %v241_v18 = vld [vmem:[#allocation7 + $0x40] sm:$0xff]  ;;  %v144_v19 = vld [vmem:[#allocation5 + $0x28] sm:$0xff]  ;;  %v240_v20 = vld [vmem:[#allocation7 + $0x38] sm:$0xff]  ;;  %p1199_p10 = por %p1198_p9, %p1197_p8 }
  0x5a   :  { %835 = vmatpush3.msra.mxu0 %v152_v3  ;;  %870 = vmatpush3.msra.mxu1 %v246_v8  ;;  %v143_v21 = vld [vmem:[#allocation5 + $0x20] sm:$0xff]  ;;  %v239_v22 = vld [vmem:[#allocation7 + $0x30] sm:$0xff]  ;;  %v142_v23 = vld [vmem:[#allocation5 + $0x18] sm:$0xff] }
  0x5b   :  { %836 = vmatprep.subr.mxu0 %v1231_v0  ;;  %871 = vmatprep.subr.mxu1 %v1231_v0  ;;  %v238_v24 = vld [vmem:[#allocation7 + $0x28] sm:$0xff]  ;;  %v141_v25 = vld [vmem:[#allocation5 + $0x10] sm:$0xff]  ;;  %v237_v26 = vld [vmem:[#allocation7 + $0x20] sm:$0xff]  ;;  %p1200_p11 = pnand %p1199_p10, %p1193_p7 }
  0x5c   :  { %837 = vmatpush3.msra.mxu0 %v151_v4  ;;  %872 = vmatpush3.msra.mxu1 %v245_v10  ;;  %v140_v27 = vld [vmem:[#allocation5 + $0x8] sm:$0xff]  ;;  %v236_v28 = vld [vmem:[#allocation7 + $0x18] sm:$0xff]  ;;  %v139_v29 = vld [vmem:[#allocation5] sm:$0xff] }
  0x5d   :  { %838 = vmatprep.subr.mxu0 %v1231_v0  ;;  %873 = vmatprep.subr.mxu1 %v1231_v0  ;;  %v138_v30 = vld [vmem:[#allocation2] sm:$0xff]  ;;  %v235_v31 = vld [vmem:[#allocation7 + $0x10] sm:$0xff]  ;;  %v234_v32 = vld [vmem:[#allocation7 + $0x8] sm:$0xff] }
  0x5e   :  { %839 = vmatpush3.msra.mxu0 %v150_v6  ;;  %874 = vmatpush3.msra.mxu1 %v244_v12  ;;  %v233_v33 = vld [vmem:[#allocation7] sm:$0xff]  ;;  %v342_v34 = vld [vmem:[#allocation8 + $0x78] sm:$0xff]  ;;  %v341_v35 = vld [vmem:[#allocation8 + $0x70] sm:$0xff] }
  0x5f   :  { %840 = vmatprep.subr.mxu0 %v1231_v0  ;;  %875 = vmatprep.subr.mxu1 %v1231_v0  ;;  %v340_v36 = vld [vmem:[#allocation8 + $0x68] sm:$0xff]  ;;  %v339_v37 = vld [vmem:[#allocation8 + $0x60] sm:$0xff]  ;;  %v338_v38 = vld [vmem:[#allocation8 + $0x58] sm:$0xff] }
  0x60   :  { %841 = vmatpush3.msra.mxu0 %v149_v9  ;;  %876 = vmatpush3.msra.mxu1 %v243_v14  ;;  %v337_v39 = vld [vmem:[#allocation8 + $0x50] sm:$0xff]  ;;  %v336_v40 = vld [vmem:[#allocation8 + $0x48] sm:$0xff]  ;;  %v335_v41 = vld [vmem:[#allocation8 + $0x40] sm:$0xff] }
  0x61   :  { %842 = vmatprep.subr.mxu0 %v1231_v0  ;;  %877 = vmatprep.subr.mxu1 %v1231_v0  ;;  %v334_v42 = vld [vmem:[#allocation8 + $0x38] sm:$0xff]  ;;  %v333_v43 = vld [vmem:[#allocation8 + $0x30] sm:$0xff]  ;;  %v332_v44 = vld [vmem:[#allocation8 + $0x28] sm:$0xff] }
  0x62   :  { %843 = vmatpush3.msra.mxu0 %v148_v11  ;;  %878 = vmatpush3.msra.mxu1 %v242_v16  ;;  %v331_v45 = vld [vmem:[#allocation8 + $0x20] sm:$0xff]  ;;  %v330_v46 = vld [vmem:[#allocation8 + $0x18] sm:$0xff]  ;;  %v329_v52 = vld [vmem:[#allocation8 + $0x10] sm:$0xff] }
  0x63   :  { %844 = vmatprep.subr.mxu0 %v1231_v0  ;;  %879 = vmatprep.subr.mxu1 %v1231_v0  ;;  %v722_v47 = vld [vmem:[%s1482_s2] ss:$0 sm:$0xff]  ;;  %v328_v53 = vld [vmem:[#allocation8 + $0x8] sm:$0xff]  ;;  %v327_v54 = vld [vmem:[#allocation8] sm:$0xff] }
  0x64   :  { %845 = vmatpush3.msra.mxu0 %v147_v13  ;;  %880 = vmatpush3.msra.mxu1 %v241_v18  ;;  %v437_v55 = vld [vmem:[#allocation10 + $0x78] sm:$0xff]  ;;  %v436_v56 = vld [vmem:[#allocation10 + $0x70] sm:$0xff]  ;;  %v435_v57 = vld [vmem:[#allocation10 + $0x68] sm:$0xff] }
  0x65   :  { %846 = vmatprep.subr.mxu0 %v1231_v0  ;;  %881 = vmatprep.subr.mxu1 %v1231_v0  ;;  %v434_v58 = vld [vmem:[#allocation10 + $0x60] sm:$0xff]  ;;  %v433_v59 = vld [vmem:[#allocation10 + $0x58] sm:$0xff]  ;;  %v432_v60 = vld [vmem:[#allocation10 + $0x50] sm:$0xff] }
  0x66   :  { %847 = vmatpush3.msra.mxu0 %v146_v15  ;;  %882 = vmatpush3.msra.mxu1 %v240_v20  ;;  %v431_v61 = vld [vmem:[#allocation10 + $0x48] sm:$0xff]  ;;  %v430_v62 = vld [vmem:[#allocation10 + $0x40] sm:$0xff]  ;;  %v429_v63 = vld [vmem:[#allocation10 + $0x38] sm:$0xff] }
  0x67   :  { %848 = vmatprep.subr.mxu0 %v1231_v0  ;;  %883 = vmatprep.subr.mxu1 %v1231_v0  ;;  %v428_v1 = vld [vmem:[#allocation10 + $0x30] sm:$0xff]  ;;  %v427_v2 = vld [vmem:[#allocation10 + $0x28] sm:$0xff]  ;;  %v426_v3 = vld [vmem:[#allocation10 + $0x20] sm:$0xff] }
  0x68   :  { %849 = vmatpush3.msra.mxu0 %v145_v17  ;;  %884 = vmatpush3.msra.mxu1 %v239_v22  ;;  %v723_v4 = vld [vmem:[%s1484_s4] ss:$0 sm:$0xff]  ;;  %v424_v10 = vld [vmem:[#allocation10 + $0x10] sm:$0xff]  ;;  %v423_v11 = vld [vmem:[#allocation10 + $0x8] sm:$0xff] }
  0x69   :  { %850 = vmatprep.subr.mxu0 %v1231_v0  ;;  %885 = vmatprep.subr.mxu1 %v1231_v0  ;;  %v425_v9 = vld [vmem:[#allocation10 + $0x18] sm:$0xff]  ;;  %v422_v12 = vld [vmem:[#allocation10] sm:$0xff]  ;;  %v530_v14 = vld [vmem:[#allocation11 + $0x70] sm:$0xff] }
  0x6a   :  { %851 = vmatpush3.msra.mxu0 %v144_v19  ;;  %886 = vmatpush3.msra.mxu1 %v238_v24  ;;  %v531_v13 = vld [vmem:[#allocation11 + $0x78] sm:$0xff]  ;;  %v529_v15 = vld [vmem:[#allocation11 + $0x68] sm:$0xff]  ;;  %v528_v16 = vld [vmem:[#allocation11 + $0x60] sm:$0xff] }
  0x6b   :  { %852 = vmatprep.subr.mxu0 %v1231_v0  ;;  %887 = vmatprep.subr.mxu1 %v1231_v0  ;;  %v527_v17 = vld [vmem:[#allocation11 + $0x58] sm:$0xff]  ;;  %v526_v18 = vld [vmem:[#allocation11 + $0x50] sm:$0xff]  ;;  %v525_v19 = vld [vmem:[#allocation11 + $0x48] sm:$0xff] }
  0x6c   :  { %853 = vmatpush3.msra.mxu0 %v143_v21  ;;  %888 = vmatpush3.msra.mxu1 %v237_v26  ;;  %v524_v20 = vld [vmem:[#allocation11 + $0x40] sm:$0xff]  ;;  %v523_v21 = vld [vmem:[#allocation11 + $0x38] sm:$0xff]  ;;  %v522_v22 = vld [vmem:[#allocation11 + $0x30] sm:$0xff] }
  0x6d   :  { %854 = vmatprep.subr.mxu0 %v1231_v0  ;;  %889 = vmatprep.subr.mxu1 %v1231_v0  ;;  %v520_v24 = vld [vmem:[#allocation11 + $0x20] sm:$0xff]  ;;  %v724_v26 = vld [vmem:[%s1486_s6] ss:$0 sm:$0xff] }
  0x6e   :  { %855 = vmatpush3.msra.mxu0 %v142_v23  ;;  %890 = vmatpush3.msra.mxu1 %v236_v28  ;;  %v521_v23 = vld [vmem:[#allocation11 + $0x28] sm:$0xff] }
  0x6f   :  { %856 = vmatprep.subr.mxu0 %v1231_v0  ;;  %891 = vmatprep.subr.mxu1 %v1231_v0 }
  0x70   :  { %857 = vmatpush3.msra.mxu0 %v141_v25  ;;  %892 = vmatpush3.msra.mxu1 %v235_v31  ;;  %v519_v25 = vld [vmem:[#allocation11 + $0x18] sm:$0xff] }
  0x71   :  { %858 = vmatprep.subr.mxu0 %v1231_v0  ;;  %893 = vmatprep.subr.mxu1 %v1231_v0 }
  0x72   :  { %859 = vmatpush3.msra.mxu0 %v140_v27  ;;  %894 = vmatpush3.msra.mxu1 %v234_v32  ;;  %v518_v32 = vld [vmem:[#allocation11 + $0x10] sm:$0xff] }
  0x73   :  { %860 = vmatprep.subr.mxu0 %v1231_v0  ;;  %895 = vmatprep.subr.mxu1 %v1231_v0 }
  0x74   :  { %861 = vmatpush3.msra.mxu0 %v139_v29  ;;  %896 = vmatpush3.msra.mxu1 %v233_v33  ;;  %v517_v33 = vld [vmem:[#allocation11 + $0x8] sm:$0xff] }
  0x75   :  { %863 = vmatmul.mubr.f32.vlgmr.msra.gmra.mxu0 %v138_v30  ;;  %900 = vmatprep.subr.mxu0 %v1231_v0 }
  0x76   :  { %932 = vmatprep.mubr.msk.f32.mxu0 %vm1232_vm0, %v1231_v0  ;;  %935 = vmatprep.subr.mxu1 %v1231_v0 }
  0x77   :  { %901 = vmatpush3.msra.mxu0 %v342_v34  ;;  %v516_v34 = vld [vmem:[#allocation11] sm:$0xff] }
  0x78   :  { %902 = vmatprep.subr.mxu0 %v1231_v0 }
  0x79   :  { %903 = vmatpush3.msra.mxu0 %v341_v35  ;;  %v625_v35 = vld [vmem:[#allocation13 + $0x78] sm:$0xff] }
  0x7a   :  { %904 = vmatprep.subr.mxu0 %v1231_v0 }
  0x7b   :  { %905 = vmatpush3.msra.mxu0 %v340_v36  ;;  %v624_v36 = vld [vmem:[#allocation13 + $0x70] sm:$0xff] }
  0x7c   :  { %906 = vmatprep.subr.mxu0 %v1231_v0 }
  0x7d   :  { %907 = vmatpush3.msra.mxu0 %v339_v37  ;;  %v623_v37 = vld [vmem:[#allocation13 + $0x68] sm:$0xff] }
  0x7e   :  { %908 = vmatprep.subr.mxu0 %v1231_v0 }
  0x7f   :  { %909 = vmatpush3.msra.mxu0 %v338_v38  ;;  %v622_v38 = vld [vmem:[#allocation13 + $0x60] sm:$0xff] }
  0x80   :  { %910 = vmatprep.subr.mxu0 %v1231_v0 }
  0x81   :  { %911 = vmatpush3.msra.mxu0 %v337_v39  ;;  %v621_v39 = vld [vmem:[#allocation13 + $0x58] sm:$0xff] }
  0x82   :  { %912 = vmatprep.subr.mxu0 %v1231_v0 }
  0x83   :  { %913 = vmatpush3.msra.mxu0 %v336_v40  ;;  %v620_v40 = vld [vmem:[#allocation13 + $0x50] sm:$0xff] }
  0x84   :  { %914 = vmatprep.subr.mxu0 %v1231_v0 }
  0x85   :  { %915 = vmatpush3.msra.mxu0 %v335_v41  ;;  %v619_v41 = vld [vmem:[#allocation13 + $0x48] sm:$0xff] }
  0x86   :  { %916 = vmatprep.subr.mxu0 %v1231_v0 }
  0x87   :  { %917 = vmatpush3.msra.mxu0 %v334_v42  ;;  %v618_v42 = vld [vmem:[#allocation13 + $0x40] sm:$0xff] }
  0x88   :  { %918 = vmatprep.subr.mxu0 %v1231_v0 }
  0x89   :  { %919 = vmatpush3.msra.mxu0 %v333_v43  ;;  %v617_v43 = vld [vmem:[#allocation13 + $0x38] sm:$0xff] }
  0x8a   :  { %920 = vmatprep.subr.mxu0 %v1231_v0 }
  0x8b   :  { %921 = vmatpush3.msra.mxu0 %v332_v44  ;;  %v616_v44 = vld [vmem:[#allocation13 + $0x30] sm:$0xff] }
  0x8c   :  { %922 = vmatprep.subr.mxu0 %v1231_v0 }
  0x8d   :  { %923 = vmatpush3.msra.mxu0 %v331_v45  ;;  %v615_v45 = vld [vmem:[#allocation13 + $0x28] sm:$0xff] }
  0x8e   :  { %924 = vmatprep.subr.mxu0 %v1231_v0 }
  0x8f   :  { %925 = vmatpush3.msra.mxu0 %v330_v46  ;;  %v614_v46 = vld [vmem:[#allocation13 + $0x20] sm:$0xff] }
  0x90   :  { %926 = vmatprep.subr.mxu0 %v1231_v0 }
  0x91   :  { %927 = vmatpush3.msra.mxu0 %v329_v52 }
  0x92   :  { %928 = vmatprep.subr.mxu0 %v1231_v0 }
  0x93   :  { %929 = vmatpush3.msra.mxu0 %v328_v53  ;;  %v612_v53 = vld [vmem:[#allocation13 + $0x10] sm:$0xff] }
  0x94   :  { %930 = vmatprep.subr.mxu0 %v1231_v0 }
  0x95   :  { %931 = vmatpush3.msra.mxu0 %v327_v54  ;;  %v611_v54 = vld [vmem:[#allocation13 + $0x8] sm:$0xff] }
  0x96   :  { %970 = vmatprep.subr.mxu0 %v1231_v0 }
 0x135   :  { %v228_v48 = vpop.f32.mrf.mxu0 }
 0x136   :  { %v1399_v49 = vadd.f32 %v722_v47, %v228_v48  ;;  %v613_v47 = vld [vmem:[#allocation13 + $0x18] sm:$0xff] }
 0x137   :  { %v864_v50 = vpop.f32.mrf.mxu0  ;;  %v725_v48 = vld [vmem:[%s1488_s8] ss:$0 sm:$0xff] }
 0x138   :  { %v232_v51 = vmax.f32 %v1399_v49, 0.0 }
 0x13a   :  { %898 = vmatmul.mubr.f32.vlgmr.msra.gmra.mxu1 %v232_v51 }
 0x13b   :  { %967 = vmatprep.mubr.msk.f32.mxu1 %vm1232_vm0, %v1231_v0  ;;  %936 = vmatpush3.msra.mxu1 %v437_v55  ;;  %v610_v55 = vld [vmem:[#allocation13] sm:$0xff] }
 0x13c   :  { %937 = vmatprep.subr.mxu1 %v1231_v0 }
 0x13d   :  { %938 = vmatpush3.msra.mxu1 %v436_v56  ;;  %v726_v56 = vld [vmem:[%s1490_s10] ss:$0 sm:$0xff] }
 0x13e   :  { %939 = vmatprep.subr.mxu1 %v1231_v0 }
 0x13f   :  { %940 = vmatpush3.msra.mxu1 %v435_v57 }
 0x140   :  { %941 = vmatprep.subr.mxu1 %v1231_v0 }
 0x141   :  { %942 = vmatpush3.msra.mxu1 %v434_v58 }
 0x142   :  { %943 = vmatprep.subr.mxu1 %v1231_v0 }
 0x143   :  { %944 = vmatpush3.msra.mxu1 %v433_v59 }
 0x144   :  { %945 = vmatprep.subr.mxu1 %v1231_v0 }
 0x145   :  { %946 = vmatpush3.msra.mxu1 %v432_v60 }
 0x146   :  { %947 = vmatprep.subr.mxu1 %v1231_v0 }
 0x147   :  { %948 = vmatpush3.msra.mxu1 %v431_v61  ;;  %v727_v61 = vld [vmem:[%s1492_s12] ss:$0 sm:$0xff] }
 0x148   :  { %949 = vmatprep.subr.mxu1 %v1231_v0 }
 0x149   :  { %950 = vmatpush3.msra.mxu1 %v430_v62 }
 0x14a   :  { %951 = vmatprep.subr.mxu1 %v1231_v0 }
 0x14b   :  { %952 = vmatpush3.msra.mxu1 %v429_v63 }
 0x14c   :  { %953 = vmatprep.subr.mxu1 %v1231_v0 }
 0x14d   :  { %954 = vmatpush3.msra.mxu1 %v428_v1 }
 0x14e   :  { %955 = vmatprep.subr.mxu1 %v1231_v0 }
 0x14f   :  { %956 = vmatpush3.msra.mxu1 %v427_v2 }
 0x150   :  { %957 = vmatprep.subr.mxu1 %v1231_v0 }
 0x151   :  { %958 = vmatpush3.msra.mxu1 %v426_v3 }
 0x152   :  { %959 = vmatprep.subr.mxu1 %v1231_v0 }
 0x153   :  { %960 = vmatpush3.msra.mxu1 %v425_v9 }
 0x154   :  { %961 = vmatprep.subr.mxu1 %v1231_v0 }
 0x155   :  { %962 = vmatpush3.msra.mxu1 %v424_v10 }
 0x156   :  { %963 = vmatprep.subr.mxu1 %v1231_v0 }
 0x157   :  { %964 = vmatpush3.msra.mxu1 %v423_v11 }
 0x158   :  { %965 = vmatprep.subr.mxu1 %v1231_v0 }
 0x159   :  { %966 = vmatpush3.msra.mxu1 %v422_v12 }
 0x15a   :  { %1005 = vmatprep.subr.mxu1 %v1231_v0 }
 0x1fa   :  { %v322_v5 = vpop.f32.mrf.mxu1 }
 0x1fb   :  { %v323_v6 = vadd.f32 %v723_v4, %v322_v5 }
 0x1fc   :  { %v899_v7 = vpop.f32.mrf.mxu1 }
 0x1fd   :  { %v326_v8 = vmax.f32 %v323_v6, 0.0 }
 0x1ff   :  { %933 = vmatmul.mubr.f32.vlgmr.msra.gmra.mxu0 %v326_v8 }
 0x200   :  { %1002 = vmatprep.mubr.msk.f32.mxu0 %vm1232_vm0, %v1231_v0  ;;  %971 = vmatpush3.msra.mxu0 %v531_v13 }
 0x201   :  { %972 = vmatprep.subr.mxu0 %v1231_v0 }
 0x202   :  { %973 = vmatpush3.msra.mxu0 %v530_v14 }
 0x203   :  { %974 = vmatprep.subr.mxu0 %v1231_v0 }
 0x204   :  { %975 = vmatpush3.msra.mxu0 %v529_v15 }
 0x205   :  { %976 = vmatprep.subr.mxu0 %v1231_v0 }
 0x206   :  { %977 = vmatpush3.msra.mxu0 %v528_v16 }
 0x207   :  { %978 = vmatprep.subr.mxu0 %v1231_v0 }
 0x208   :  { %979 = vmatpush3.msra.mxu0 %v527_v17 }
 0x209   :  { %980 = vmatprep.subr.mxu0 %v1231_v0 }
 0x20a   :  { %981 = vmatpush3.msra.mxu0 %v526_v18 }
 0x20b   :  { %982 = vmatprep.subr.mxu0 %v1231_v0 }
 0x20c   :  { %983 = vmatpush3.msra.mxu0 %v525_v19 }
 0x20d   :  { %984 = vmatprep.subr.mxu0 %v1231_v0 }
 0x20e   :  { %985 = vmatpush3.msra.mxu0 %v524_v20 }
 0x20f   :  { %986 = vmatprep.subr.mxu0 %v1231_v0 }
 0x210   :  { %987 = vmatpush3.msra.mxu0 %v523_v21 }
 0x211   :  { %988 = vmatprep.subr.mxu0 %v1231_v0 }
 0x212   :  { %989 = vmatpush3.msra.mxu0 %v522_v22 }
 0x213   :  { %990 = vmatprep.subr.mxu0 %v1231_v0 }
 0x214   :  { %991 = vmatpush3.msra.mxu0 %v521_v23 }
 0x215   :  { %992 = vmatprep.subr.mxu0 %v1231_v0 }
 0x216   :  { %993 = vmatpush3.msra.mxu0 %v520_v24 }
 0x217   :  { %994 = vmatprep.subr.mxu0 %v1231_v0 }
 0x218   :  { %995 = vmatpush3.msra.mxu0 %v519_v25 }
 0x219   :  { %996 = vmatprep.subr.mxu0 %v1231_v0 }
 0x21a   :  { %997 = vmatpush3.msra.mxu0 %v518_v32 }
 0x21b   :  { %998 = vmatprep.subr.mxu0 %v1231_v0 }
 0x21c   :  { %999 = vmatpush3.msra.mxu0 %v517_v33 }
 0x21d   :  { %1000 = vmatprep.subr.mxu0 %v1231_v0 }
 0x21e   :  { %1001 = vmatpush3.msra.mxu0 %v516_v34 }
 0x2bf   :  { %v416_v27 = vpop.f32.mrf.mxu0 }
 0x2c0   :  { %v417_v28 = vadd.f32 %v724_v26, %v416_v27 }
 0x2c1   :  { %v934_v29 = vpop.f32.mrf.mxu0 }
 0x2c2   :  { %v1445_v30 = vadd.f32 %v417_v28, %v1399_v49 }
 0x2c4   :  { %v421_v31 = vmax.f32 %v1445_v30, 0.0 }
 0x2c6   :  { %968 = vmatmul.mubr.f32.vlgmr.msra.gmra.mxu1 %v421_v31 }
 0x2c7   :  { %1037 = vmatprep.mubr.msk.f32.mxu1 %vm1232_vm0, %v1231_v0  ;;  %1006 = vmatpush3.msra.mxu1 %v625_v35 }
 0x2c8   :  { %1007 = vmatprep.subr.mxu1 %v1231_v0 }
 0x2c9   :  { %1008 = vmatpush3.msra.mxu1 %v624_v36 }
 0x2ca   :  { %1009 = vmatprep.subr.mxu1 %v1231_v0 }
 0x2cb   :  { %1010 = vmatpush3.msra.mxu1 %v623_v37 }
 0x2cc   :  { %1011 = vmatprep.subr.mxu1 %v1231_v0 }
 0x2cd   :  { %1012 = vmatpush3.msra.mxu1 %v622_v38 }
 0x2ce   :  { %1013 = vmatprep.subr.mxu1 %v1231_v0 }
 0x2cf   :  { %1014 = vmatpush3.msra.mxu1 %v621_v39 }
 0x2d0   :  { %1015 = vmatprep.subr.mxu1 %v1231_v0 }
 0x2d1   :  { %1016 = vmatpush3.msra.mxu1 %v620_v40 }
 0x2d2   :  { %1017 = vmatprep.subr.mxu1 %v1231_v0 }
 0x2d3   :  { %1018 = vmatpush3.msra.mxu1 %v619_v41 }
 0x2d4   :  { %1019 = vmatprep.subr.mxu1 %v1231_v0 }
 0x2d5   :  { %1020 = vmatpush3.msra.mxu1 %v618_v42 }
 0x2d6   :  { %1021 = vmatprep.subr.mxu1 %v1231_v0 }
 0x2d7   :  { %1022 = vmatpush3.msra.mxu1 %v617_v43 }
 0x2d8   :  { %1023 = vmatprep.subr.mxu1 %v1231_v0 }
 0x2d9   :  { %1024 = vmatpush3.msra.mxu1 %v616_v44 }
 0x2da   :  { %1025 = vmatprep.subr.mxu1 %v1231_v0 }
 0x2db   :  { %1026 = vmatpush3.msra.mxu1 %v615_v45 }
 0x2dc   :  { %1027 = vmatprep.subr.mxu1 %v1231_v0 }
 0x2dd   :  { %1028 = vmatpush3.msra.mxu1 %v614_v46 }
 0x2de   :  { %1029 = vmatprep.subr.mxu1 %v1231_v0 }
 0x2df   :  { %1030 = vmatpush3.msra.mxu1 %v613_v47 }
 0x2e0   :  { %1031 = vmatprep.subr.mxu1 %v1231_v0 }
 0x2e1   :  { %1032 = vmatpush3.msra.mxu1 %v612_v53 }
 0x2e2   :  { %1033 = vmatprep.subr.mxu1 %v1231_v0 }
 0x2e3   :  { %1034 = vmatpush3.msra.mxu1 %v611_v54 }
 0x2e4   :  { %1035 = vmatprep.subr.mxu1 %v1231_v0 }
 0x2e5   :  { %1036 = vmatpush3.msra.mxu1 %v610_v55 }
 0x386   :  { %v511_v49 = vpop.f32.mrf.mxu1 }
 0x387   :  { %v512_v50 = vadd.f32 %v725_v48, %v511_v49 }
 0x388   :  { %v969_v51 = vpop.f32.mrf.mxu1 }
 0x389   :  { %v515_v52 = vmax.f32 %v512_v50, 0.0 }
 0x38b   :  { %1003 = vmatmul.mubr.f32.vlgmr.msra.gmra.mxu0 %v515_v52 }
 0x44b   :  { %v605_v57 = vpop.f32.mrf.mxu0 }
 0x44c   :  { %v606_v58 = vadd.f32 %v726_v56, %v605_v57 }
 0x44d   :  { %v1004_v59 = vpop.f32.mrf.mxu0 }
 0x44e   :  { %v609_v60 = vadd.f32 %v606_v58, %v1445_v30 }
 0x450   :  { %1038 = vmatmul.mubr.f32.vlgmr.msra.gmra.mxu1 %v609_v60 }
 0x510   :  { %v699_v62 = vpop.f32.mrf.mxu1 }
 0x511   :  { %v700_v0 = vadd.f32 %v727_v61, %v699_v62 }
 0x512   :  { %v1039_v63 = vpop.f32.mrf.mxu1 }
 0x513   :  { %703 = vst [vmem:[#allocation14] sm:$0xff] %v700_v0 }
 0x514   :  { %1203 = shalt.err (!%p1200_p11)
}
 0x515   :  { %713 = dma.vmem_to_hbm [thread:$0]  %s711_s30, 128, %s1493_s13, [#allocation4]  }
 0x516   :  { %1220 = dma.done.wait [#allocation4], 128  }
 0x517   :  { %1221 = vsyncadd [#allocation4], 4294967168 }
 0x518   :  { %717 = vsyncpa [#allocation3], 1 }
 0x519   :  { %718 = vsyncpa [#allocation6], 1 }
 0x51a   :  { %719 = vsyncpa [#allocation9], 1 }
 0x51b   :  { %720 = vsyncpa [#allocation12], 1 }
 0x51c   :  { %721 = vsyncpa [#allocation4], 1 }

</bundles_post_ra>
